<compile_context>
chip_gen: v7x
topology: tpu7x:2x2x1
jax: 0.10.0
libtpu: 0.0.40
codegen_flags: <defaults>
</compile_context>

<pallas_src>
import math

import jax
import jax.numpy as jnp
from jax.experimental import pallas as pl
from jax.experimental.pallas import tpu as pltpu

# Small shapes consistent with the module's usage inside the conditional
# transformer (d_model=64, max_len=window_size-ish, batch=2, seq=16).
B, S = 2, 16          # batch, sequence length of the example input
D_MODEL = 64          # d_model
MAX_LEN = 32          # max_len of the pe buffer (>= S)


def make_pe_buffer(d_model: int, max_len: int) -> jnp.ndarray:
    """Exact equivalent of the PyTorch register_buffer 'pe' (without the
    leading unsqueeze(0) — broadcasting is handled explicitly)."""
    position = jnp.arange(max_len, dtype=jnp.float32)[:, None]
    div_term = jnp.exp(
        jnp.arange(0, d_model, 2, dtype=jnp.float32) * (-math.log(10000.0) / d_model)
    )
    pe = jnp.zeros((max_len, d_model), jnp.float32)
    pe = pe.at[:, 0::2].set(jnp.sin(position * div_term))
    pe = pe.at[:, 1::2].set(jnp.cos(position * div_term))
    return pe


def _pos_enc_kernel(x_ref, pe_ref, o_ref):
    # x_ref: (B, S, D)  pe_ref: (1, S, D)  -> broadcasted add over batch.
    o_ref[...] = x_ref[...] + pe_ref[...]


def positional_encoding(x: jnp.ndarray, pe: jnp.ndarray) -> jnp.ndarray:
    """Forward pass of PositionalEncoding.  `pe` is the (max_len, d_model)
    buffer from make_pe_buffer.  Shape-dependent branches of the PyTorch
    forward are resolved statically here (shapes are static under jit)."""
    # Branch 1: 3-D input with batch size 1 -> identity (no kernel).
    if x.ndim == 3 and x.shape[0] == 1:
        return x
    # Branch 3: sequence longer than the buffer -> error (static check).
    if x.shape[1] > pe.shape[0]:
        raise ValueError("Input sequence length exceeds maximum length.")

    b, s, d = x.shape
    pe_slice = pe[:s].reshape(1, s, d)            # static slice, done once per shape

    vmem = pl.BlockSpec(memory_space=pltpu.MemorySpace.VMEM)
    return pl.pallas_call(
        _pos_enc_kernel,
        out_shape=jax.ShapeDtypeStruct(x.shape, x.dtype),
        in_specs=[vmem, vmem],
        out_specs=vmem,
        cost_estimate=pl.CostEstimate(
            flops=b * s * d,
            transcendentals=0,
            bytes_accessed=(2 * b * s * d + s * d) * 4,
        ),
    )(x, pe_slice)


if __name__ == "__main__":
    key = jax.random.PRNGKey(0)
    x = jax.random.normal(key, (B, S, D_MODEL), dtype=jnp.float32)
    pe = make_pe_buffer(D_MODEL, MAX_LEN)

    fwd = jax.jit(positional_encoding)
    out = fwd(x, pe)
    jax.block_until_ready(out)

    # Reference (pure JAX, mirrors the PyTorch forward in eval mode).
    ref = x + pe[None, :S, :]
    assert out.shape == x.shape
    assert jnp.allclose(out, ref, atol=1e-6, rtol=1e-6)

    # Passthrough branch (batch == 1): must return the input unchanged.
    x1 = x[:1]
    out1 = positional_encoding(x1, pe)
    assert jnp.array_equal(out1, x1)

    print("KERNEL_OK")
</pallas_src>

<mosaic_0001>
module attributes {stable_mosaic.version = 11 : i64} {
  func.func @_pos_enc_kernel(%arg0: memref<2x16x64xf32, #tpu.memory_space<vmem>>, %arg1: memref<1x16x64xf32, #tpu.memory_space<vmem>>, %arg2: memref<2x16x64xf32, #tpu.memory_space<vmem>>) attributes {dimension_semantics = [], scalar_prefetch = 0 : i64, scratch_operands = 0 : i64, tpu.core_type = #tpu.core_type<tc>} {
    %c0 = arith.constant 0 : index
    %c0_0 = arith.constant 0 : index
    %c0_1 = arith.constant 0 : index
    %0 = vector.load %arg0[%c0, %c0_0, %c0_1] : memref<2x16x64xf32, #tpu.memory_space<vmem>>, vector<2x16x64xf32>
    %c0_2 = arith.constant 0 : index
    %c0_3 = arith.constant 0 : index
    %c0_4 = arith.constant 0 : index
    %1 = vector.load %arg1[%c0_2, %c0_3, %c0_4] : memref<1x16x64xf32, #tpu.memory_space<vmem>>, vector<1x16x64xf32>
    %2 = vector.broadcast %1 : vector<1x16x64xf32> to vector<2x16x64xf32>
    %3 = arith.addf %0, %2 : vector<2x16x64xf32>
    %c0_5 = arith.constant 0 : index
    %c0_6 = arith.constant 0 : index
    %c0_7 = arith.constant 0 : index
    %4 = vector.load %arg2[%c0_5, %c0_6, %c0_7] : memref<2x16x64xf32, #tpu.memory_space<vmem>>, vector<2x16x64xf32>
    tpu.vector_store %arg2[%c0_5, %c0_6, %c0_7], %3 {strides = array<i32>} : memref<2x16x64xf32, #tpu.memory_space<vmem>>, vector<2x16x64xf32>,
    return
  }
}

</mosaic_0001>

<bundles_post_ra>
// kernel: positional_encoding.1
= control target key start
LH: loop header
LB: loop body
LE: loop exit
PB: predicated region body
PF: predicated region fallthrough
CT: control target
= control target key end

     0   :  { %vm22_vm0 = vcmask 523264   ;;  %s70_s21 = smov [#allocation2]   ;;  %s122_s0 = inlined_call_operand.vmem [shape: f32[2,16,64], index: 0, kind: input, shape index: {}]   ;;  %s123_s1 = inlined_call_operand.vmem [shape: f32[1,16,64], index: 1, kind: input, shape index: {}]   ;;  %s124_s2 = inlined_call_operand.hbm [shape: f32[2,16,64], index: 2, kind: output, shape index: {}]  }
   0x1   :  { %v12_v0 = vld [vmem:[%s122_s0] sm:$0xff]  ;;  %v13_v2 = vld [vmem:[%s122_s0 + $0x8] sm:$0xff]  ;;  %v14_v5 = vld [vmem:[%s122_s0 + $0x10] sm:$0xff]  ;;  %s32_s22 = sshll.u32 %s70_s21, 4  ;;  %s33_s22 = int_to_ptr.vmem [resolvable:$true] %s32_s22 }
   0x2   :  { %v16_v1 = vld [vmem:[%s123_s1] sm:$0xff]  ;;  %v17_v4 = vld [vmem:[%s123_s1 + $0x8] sm:$0xff]  ;;  %v15_v6 = vld [vmem:[%s122_s0 + $0x18] sm:$0xff] }
   0x3   :  { %v18_v3 = vadd.f32 %v16_v1, %v12_v0  ;;  %v19_v7 = vadd.f32 %v17_v4, %v13_v2  ;;  %v20_v8 = vadd.f32 %v16_v1, %v14_v5  ;;  %v21_v9 = vadd.f32 %v17_v4, %v15_v6 }
   0x4   :  { %7 = vsyncpa [#allocation3], 0  ;;  %s46_s1 = scalar_lea.vmem %s33_s22, 512  ;;  %p51_p1 = scmp.lt.s32.totalorder %s33_s22, %s33_s22 }
   0x5   :  { %23 = vst.msk [vmem:[#allocation2] sm:$0xff] %vm22_vm0, %v18_v3  ;;  %24 = vst.msk [vmem:[#allocation2 + $0x8] sm:$0xff] %vm22_vm0, %v19_v7  ;;  %p47_p0 = scmp.ne.s32.totalorder %s33_s22, %s46_s1  ;;  %p52_p2 = scmp.lt.s32.totalorder %s46_s1, %s46_s1 }
   0x6   :  { %25 = vst.msk [vmem:[#allocation2 + $0x10] sm:$0xff] %vm22_vm0, %v20_v8  ;;  %26 = vst.msk [vmem:[#allocation2 + $0x18] sm:$0xff] %vm22_vm0, %v21_v9 }
   0x7   :  { %p53_p3 = por %p52_p2, %p51_p1 }
   0x9   :  { %p54_p4 = pnand %p53_p3, %p47_p0 }
   0xb   :  { %57 = shalt.err (!%p54_p4)
}
   0xc   :  { %s58_s24 = scalar_lea.hbm %s124_s2, 512 }
   0xd   :  { %p59_p5 = scmp.ne.s32.totalorder %s124_s2, %s58_s24  ;;  %p62_p6 = scmp.lt.u32.totalorder %s58_s24, %s124_s2 }
   0xf   :  { %p64_p7 = pnand %p62_p6, %p59_p5 }
  0x11   :  { %67 = shalt.err (!%p64_p7)
}
  0x12   :  { %s71_s29 = smov 128   ;;  %s72_s30 = smov 8  }
  0x13   :  { %38 = dma.vmem_to_hbm [thread:$0]  %s33_s22, 512, %s124_s2, [#allocation3], %s71_s29, %s71_s29, %s72_s30  }
  0x14   :  { %68 = dma.done.wait [#allocation3], 512  }
  0x15   :  { %69 = vsyncadd [#allocation3], 4294966784 }
  0x16   :  { %42 = vsyncpa [#allocation3], 1 }

</bundles_post_ra>
